<compile_context>
chip_gen: v6e
topology: v6e:2x2x1
jax: 0.10.0
libtpu: 0.0.40
codegen_flags: <defaults>
</compile_context>

<pallas_src>
import math

import jax
import jax.numpy as jnp
from jax.experimental import pallas as pl
from jax.experimental.pallas import tpu as pltpu

_BN_EPS = 1e-5          # PyTorch BatchNorm1d default eps
_NEG_SLOPE = 0.2        # LeakySiLU negative_slope in NeuralSampler
_MXU_DTYPE = jnp.bfloat16
_DEFAULT_FUSED_BUDGET = 16 * 1024 * 1024   # y-buffer budget, conservative vs v7x VMEM


# --------------------------------------------------------------------------- math

def _leaky_silu(x):
    # (1-a)*silu(x) + a*x  ==  x * ((1-a)*sigmoid(x) + a)
    # TODO(synk): on v6e/v7x this sigmoid chain could run in bf16 (bf16 EUP);
    # kept f32 so the identical kernel is also correct/efficient on v5e.
    return x * ((1.0 - _NEG_SLOPE) * jax.nn.sigmoid(x) + _NEG_SLOPE)


def _mlp_tile(eps, w1, b1, w2, b2, w3, b3, w4, b4):
    """4-layer MLP on one (tb, z_dim) tile: bf16 MXU inputs, f32 accumulation."""
    def lin(x, w, b):
        return jnp.dot(x.astype(_MXU_DTYPE), w,
                       preferred_element_type=jnp.float32) + b
    h = _leaky_silu(lin(eps, w1, b1))
    h = _leaky_silu(lin(h, w2, b2))
    h = _leaky_silu(lin(h, w3, b3))
    return lin(h, w4, b4)                      # (tb, z_dim) float32


# --------------------------------------------------------------------------- tiling

def _pick_tile(batch, z_dim, hidden, target_bytes):
    """Rows per batch tile so the f32 working set is a few MiB (multiple of 8)."""
    per_row = 4 * (2 * z_dim + 3 * hidden)
    tb = max(8, (target_bytes // max(per_row, 1)) // 8 * 8)
    batch_padded = -(-batch // 8) * 8
    return int(min(tb, batch_padded))


def _weight_specs(z_dim, hidden):
    # Constant index maps: the weight/bias blocks are fetched once and stay
    # resident across the grid (no re-DMA per step).
    const = lambda shape: pl.BlockSpec(shape, lambda i: (0, 0))
    return [
        const((z_dim, hidden)), const((1, hidden)),
        const((hidden, hidden)), const((1, hidden)),
        const((hidden, hidden)), const((1, hidden)),
        const((hidden, z_dim)), const((1, z_dim)),
    ]


# --------------------------------------------------------------------------- kernels

def _make_fused_kernel(batch, tb, nt, batch_pad):
    """MLP + full-batch BatchNorm fused into one kernel (y stays in VMEM)."""
    inv_n = 1.0 / float(batch)

    def kernel(eps_ref, w1_ref, b1_ref, w2_ref, b2_ref, w3_ref, b3_ref,
               w4_ref, b4_ref, z_ref, sum_ref):
        i = pl.program_id(0)

        @pl.when(i == 0)
        def _():
            sum_ref[...] = jnp.zeros_like(sum_ref)

        y = _mlp_tile(eps_ref[...], w1_ref[...], b1_ref[...], w2_ref[...],
                      b2_ref[...], w3_ref[...], b3_ref[...], w4_ref[...],
                      b4_ref[...])                                   # (tb, z) f32

        # masked per-feature sum (padded rows contribute zero)
        rows = i * tb + jax.lax.broadcasted_iota(jnp.int32, (tb, 1), 0)
        sum_ref[...] += jnp.sum(jnp.where(rows < batch, y, 0.0),
                                axis=0, keepdims=True)

        # stash the pre-BN tile into the VMEM-resident output buffer
        start = pl.multiple_of(i * tb, 8)
        z_ref[pl.ds(start, tb), :] = y.astype(z_ref.dtype)

        @pl.when(i == nt - 1)
        def _():
            # exact two-pass statistics over the resident buffer (no
            # E[y^2]-E[y]^2 catastrophic cancellation), then normalize in place.
            mean = sum_ref[...] * inv_n                              # (1, z)
            y_all = z_ref[...].astype(jnp.float32)                   # (bp, z)
            arows = jax.lax.broadcasted_iota(jnp.int32, (batch_pad, 1), 0)
            d = jnp.where(arows < batch, y_all - mean, 0.0)
            var = jnp.sum(d * d, axis=0, keepdims=True) * inv_n      # biased var
            inv_std = jax.lax.rsqrt(var + _BN_EPS)                   # EUP
            z_ref[...] = ((y_all - mean) * inv_std).astype(z_ref.dtype)

    return kernel


def _make_mlp_partials_kernel(batch, tb, z_dim):
    """Fallback pass 1: MLP tile -> bf16 y + per-tile partial sum/sum^2 block."""
    def kernel(eps_ref, w1_ref, b1_ref, w2_ref, b2_ref, w3_ref, b3_ref,
               w4_ref, b4_ref, y_ref, part_ref):
        i = pl.program_id(0)
        y = _mlp_tile(eps_ref[...], w1_ref[...], b1_ref[...], w2_ref[...],
                      b2_ref[...], w3_ref[...], b3_ref[...], w4_ref[...],
                      b4_ref[...])
        y_ref[...] = y.astype(y_ref.dtype)                 # bf16 HBM intermediate

        # stats over exactly what will be normalized (bf16-rounded y), pad-masked
        yq = y.astype(jnp.bfloat16).astype(jnp.float32)
        rows = i * tb + jax.lax.broadcasted_iota(jnp.int32, (tb, 1), 0)
        yv = jnp.where(rows < batch, yq, 0.0)
        s = jnp.sum(yv, axis=0, keepdims=True)             # (1, z)
        q = jnp.sum(yv * yv, axis=0, keepdims=True)        # (1, z)

        # pack [sum; sum_sq; zeros...] into an (8, z_dim) sublane-aligned block;
        # each grid step owns its own block -> grid axis can be 'parallel'.
        srow = jax.lax.broadcasted_iota(jnp.int32, (8, z_dim), 0)
        part = jnp.where(srow == 0, jnp.broadcast_to(s, (8, z_dim)),
                         jnp.where(srow == 1, jnp.broadcast_to(q, (8, z_dim)),
                                   0.0))
        part_ref[...] = part[None]

    return kernel


def _bn_apply_kernel(y_ref, mean_ref, inv_std_ref, z_ref):
    """Fallback pass 2: (y - mean) * inv_std."""
    y = y_ref[...].astype(jnp.float32)
    z_ref[...] = ((y - mean_ref[...]) * inv_std_ref[...]).astype(z_ref.dtype)


# --------------------------------------------------------------------------- wrappers

def neural_sampler_forward(eps, params, *, dtype=jnp.float32,
                           fused_budget_bytes=_DEFAULT_FUSED_BUDGET,
                           target_tile_bytes=2 * 1024 * 1024):
    batch, z_dim = eps.shape
    w1, b1, w2, b2, w3, b3, w4, b4 = params
    hidden = w1.shape[1]

    # bf16 weights for the MXU (halves VMEM residency + vld pressure);
    # biases stay f32 and are added after the f32 accumulation.
    wb = (w1.astype(_MXU_DTYPE), b1.astype(jnp.float32),
          w2.astype(_MXU_DTYPE), b2.astype(jnp.float32),
          w3.astype(_MXU_DTYPE), b3.astype(jnp.float32),
          w4.astype(_MXU_DTYPE), b4.astype(jnp.float32))

    tb = _pick_tile(batch, z_dim, hidden, target_tile_bytes)
    nt = pl.cdiv(batch, tb)
    batch_pad = nt * tb

    eps_p = eps.astype(jnp.float32)
    if batch_pad != batch:
        eps_p = jnp.pad(eps_p, ((0, batch_pad - batch), (0, 0)))

    eps_spec = pl.BlockSpec((tb, z_dim), lambda i: (i, 0))
    w_specs = _weight_specs(z_dim, hidden)

    # explicit scoped-VMEM budget (v7x: 64 MiB physical, 32 MiB default scoped)
    weight_bytes = 2 * (z_dim * hidden + 2 * hidden * hidden + hidden * z_dim) \
        + 4 * (3 * hidden + z_dim)
    act_bytes = 4 * tb * (2 * z_dim + 3 * hidden)
    z_buf_bytes = 4 * batch_pad * z_dim
    vmem_limit = int(min(48 * 1024 * 1024,
                         max(16 * 1024 * 1024,
                             2 * (weight_bytes + act_bytes) + z_buf_bytes
                             + (2 << 20))))

    if z_buf_bytes <= fused_budget_bytes:
        # Fully fused MLP + BatchNorm: pre-BN activations never touch HBM.
        z = pl.pallas_call(
            _make_fused_kernel(batch, tb, nt, batch_pad),
            out_shape=jax.ShapeDtypeStruct((batch_pad, z_dim), jnp.float32),
            grid=(nt,),
            in_specs=[eps_spec] + w_specs,
            out_specs=pl.BlockSpec((batch_pad, z_dim), lambda i: (0, 0)),
            scratch_shapes=[pltpu.VMEM((1, z_dim), jnp.float32)],
            compiler_params=pltpu.CompilerParams(
                dimension_semantics=("arbitrary",),   # output + stats carried across steps
                vmem_limit_bytes=vmem_limit),
        )(eps_p, *wb)
        return z[:batch].astype(dtype)

    # ---- large-batch fallback: two passes, 'parallel' grids ------------------
    y, partials = pl.pallas_call(
        _make_mlp_partials_kernel(batch, tb, z_dim),
        out_shape=(jax.ShapeDtypeStruct((batch_pad, z_dim), jnp.bfloat16),
                   jax.ShapeDtypeStruct((nt, 8, z_dim), jnp.float32)),
        grid=(nt,),
        in_specs=[eps_spec] + w_specs,
        out_specs=[pl.BlockSpec((tb, z_dim), lambda i: (i, 0)),
                   pl.BlockSpec((1, 8, z_dim), lambda i: (i, 0, 0))],
        compiler_params=pltpu.CompilerParams(
            dimension_semantics=("parallel",),        # per-tile partials -> no races
            vmem_limit_bytes=vmem_limit),
    )(eps_p, *wb)

    # reduce the tiny (nt, 8, z_dim) partials in XLA
    sums = jnp.sum(partials[:, 0, :], axis=0, keepdims=True)
    ssqs = jnp.sum(partials[:, 1, :], axis=0, keepdims=True)
    mean = sums / batch
    var = jnp.maximum(ssqs / batch - mean * mean, 0.0)   # biased variance
    inv_std = jax.lax.rsqrt(var + _BN_EPS)

    z = pl.pallas_call(
        _bn_apply_kernel,
        out_shape=jax.ShapeDtypeStruct((batch_pad, z_dim), jnp.float32),
        grid=(nt,),
        in_specs=[pl.BlockSpec((tb, z_dim), lambda i: (i, 0)),
                  pl.BlockSpec((1, z_dim), lambda i: (0, 0)),
                  pl.BlockSpec((1, z_dim), lambda i: (0, 0))],
        out_specs=pl.BlockSpec((tb, z_dim), lambda i: (i, 0)),
        compiler_params=pltpu.CompilerParams(
            dimension_semantics=("parallel",)),
    )(y, mean, inv_std)
    return z[:batch].astype(dtype)


def neural_sample(key, params, batch_size, z_dim, **kwargs):
    """NeuralSampler(z_dim).forward(batch_size): eps ~ N(0, I), then MLP + BN."""
    # TODO(synk): in-kernel pltpu.prng_seed/stateful_normal fusion omitted —
    # it does not lower on the CPU/interpret validation path; jax.random.normal
    # matches torch.randn semantics exactly.
    eps = jax.random.normal(key, (batch_size, z_dim), dtype=jnp.float32)
    return neural_sampler_forward(eps, params, **kwargs)


# --------------------------------------------------------------------------- params + ref

def init_params(key, z_dim):
    hidden = 4 * z_dim
    shapes = [(z_dim, hidden), (hidden, hidden), (hidden, hidden), (hidden, z_dim)]
    params = []
    for fi, fo in shapes:
        key, kw, kb = jax.random.split(key, 3)
        w = jax.random.normal(kw, (fi, fo), jnp.float32) / math.sqrt(fi)
        b = 0.1 * jax.random.normal(kb, (1, fo), jnp.float32)
        params += [w, b]
    return params


def _reference(eps, params):
    """Pure-JAX mirror of the kernel numerics (bf16 matmul inputs, f32 acc)."""
    w1, b1, w2, b2, w3, b3, w4, b4 = params
    def lin(x, w, b):
        return jnp.dot(x.astype(_MXU_DTYPE), w.astype(_MXU_DTYPE),
                       preferred_element_type=jnp.float32) + b
    h = _leaky_silu(lin(eps, w1, b1))
    h = _leaky_silu(lin(h, w2, b2))
    h = _leaky_silu(lin(h, w3, b3))
    y = lin(h, w4, b4)
    mean = jnp.mean(y, axis=0, keepdims=True)
    var = jnp.mean((y - mean) ** 2, axis=0, keepdims=True)
    return (y - mean) * jax.lax.rsqrt(var + _BN_EPS)


# --------------------------------------------------------------------------- demo / check

if __name__ == "__main__":
    key = jax.random.PRNGKey(0)
    z_dim = 32          # hidden_dim = 128
    batch = 64

    pkey, ekey, skey = jax.random.split(key, 3)
    params = init_params(pkey, z_dim)

    # Production-style call (eps drawn internally, like torch.randn in forward).
    z = jax.block_until_ready(neural_sample(skey, params, batch_size=batch, z_dim=z_dim))
    assert z.shape == (batch, z_dim), z.shape
    assert bool(jnp.all(jnp.isfinite(z)))
    # BatchNorm1d(affine=False) with batch statistics -> per-feature mean 0 / std 1.
    col_mean = jnp.mean(z, axis=0)
    col_std = jnp.std(z, axis=0)
    assert jnp.allclose(col_mean, 0.0, atol=1e-3), col_mean
    assert jnp.allclose(col_std, 1.0, atol=2e-2), col_std

    # Deterministic check: known eps through the fused kernel vs a pure-JAX
    # mirror of the same numerics.
    eps = jax.random.normal(ekey, (batch, z_dim), dtype=jnp.float32)
    ref = _reference(eps, params)
    z_fused = jax.block_until_ready(neural_sampler_forward(eps, params))
    assert jnp.allclose(z_fused, ref, atol=2e-3, rtol=2e-3), \
        float(jnp.max(jnp.abs(z_fused - ref)))

    # Exercise the large-batch (two-pass, 'parallel' grid) fallback as well.
    z_two = jax.block_until_ready(
        neural_sampler_forward(eps, params, fused_budget_bytes=0))
    assert z_two.shape == (batch, z_dim)
    assert jnp.allclose(z_two, ref, atol=3e-2, rtol=3e-2), \
        float(jnp.max(jnp.abs(z_two - ref)))

    # TODO(synk): BatchNorm1d running_mean/running_var buffer updates
    # (momentum=0.5) are training-side state and do not affect this forward
    # output; they are not materialized here.

    print("KERNEL_OK")
</pallas_src>

<mosaic_0001>
module attributes {stable_mosaic.version = 11 : i64} {
  func.func @kernel(%arg0: i32, %arg1: memref<64x32xf32, #tpu.memory_space<vmem>>, %arg2: memref<32x128xbf16, #tpu.memory_space<vmem>>, %arg3: memref<1x128xf32, #tpu.memory_space<vmem>>, %arg4: memref<128x128xbf16, #tpu.memory_space<vmem>>, %arg5: memref<1x128xf32, #tpu.memory_space<vmem>>, %arg6: memref<128x128xbf16, #tpu.memory_space<vmem>>, %arg7: memref<1x128xf32, #tpu.memory_space<vmem>>, %arg8: memref<128x32xbf16, #tpu.memory_space<vmem>>, %arg9: memref<1x32xf32, #tpu.memory_space<vmem>>, %arg10: memref<64x32xf32, #tpu.memory_space<vmem>>, %arg11: memref<1x32xf32, #tpu.memory_space<vmem>>) attributes {dimension_semantics = [#tpu.dimension_semantics<arbitrary>], iteration_bounds = array<i64: 1>, scalar_prefetch = 0 : i64, scratch_operands = 1 : i64, tpu.core_type = #tpu.core_type<tc>, window_params = [{transform_indices = @transform_0, window_bounds = array<i64: 64, 32>}, {pipeline_mode = #tpu.pipeline_mode<synchronous>, transform_indices = @transform_1, window_bounds = array<i64: 32, 128>}, {pipeline_mode = #tpu.pipeline_mode<synchronous>, transform_indices = @transform_2, window_bounds = array<i64: 1, 128>}, {pipeline_mode = #tpu.pipeline_mode<synchronous>, transform_indices = @transform_3, window_bounds = array<i64: 128, 128>}, {pipeline_mode = #tpu.pipeline_mode<synchronous>, transform_indices = @transform_4, window_bounds = array<i64: 1, 128>}, {pipeline_mode = #tpu.pipeline_mode<synchronous>, transform_indices = @transform_5, window_bounds = array<i64: 128, 128>}, {pipeline_mode = #tpu.pipeline_mode<synchronous>, transform_indices = @transform_6, window_bounds = array<i64: 1, 128>}, {pipeline_mode = #tpu.pipeline_mode<synchronous>, transform_indices = @transform_7, window_bounds = array<i64: 128, 32>}, {pipeline_mode = #tpu.pipeline_mode<synchronous>, transform_indices = @transform_8, window_bounds = array<i64: 1, 32>}, {pipeline_mode = #tpu.pipeline_mode<synchronous>, transform_indices = @transform_9, window_bounds = array<i64: 64, 32>}]} {
    %c0_i32 = arith.constant 0 : i32
    %0 = arith.cmpi eq, %arg0, %c0_i32 : i32
    %1 = arith.extui %0 : i1 to i32
    %c0_i32_0 = arith.constant 0 : i32
    %2 = arith.cmpi ne, %1, %c0_i32_0 : i32
    scf.if %2 {
      %cst_41 = arith.constant 0.000000e+00 : f32
      %80 = vector.broadcast %cst_41 : f32 to vector<1x32xf32>
      %c0_42 = arith.constant 0 : index
      %c0_43 = arith.constant 0 : index
      %81 = vector.load %arg11[%c0_42, %c0_43] : memref<1x32xf32, #tpu.memory_space<vmem>>, vector<1x32xf32>
      tpu.vector_store %arg11[%c0_42, %c0_43], %80 {strides = array<i32>} : memref<1x32xf32, #tpu.memory_space<vmem>>, vector<1x32xf32>,
    } else {
    }
    %c0 = arith.constant 0 : index
    %c0_1 = arith.constant 0 : index
    %3 = vector.load %arg1[%c0, %c0_1] : memref<64x32xf32, #tpu.memory_space<vmem>>, vector<64x32xf32>
    %c0_2 = arith.constant 0 : index
    %c0_3 = arith.constant 0 : index
    %4 = vector.load %arg2[%c0_2, %c0_3] : memref<32x128xbf16, #tpu.memory_space<vmem>>, vector<32x128xbf16>
    %c0_4 = arith.constant 0 : index
    %c0_5 = arith.constant 0 : index
    %5 = vector.load %arg3[%c0_4, %c0_5] : memref<1x128xf32, #tpu.memory_space<vmem>>, vector<1x128xf32>
    %c0_6 = arith.constant 0 : index
    %c0_7 = arith.constant 0 : index
    %6 = vector.load %arg4[%c0_6, %c0_7] : memref<128x128xbf16, #tpu.memory_space<vmem>>, vector<128x128xbf16>
    %c0_8 = arith.constant 0 : index
    %c0_9 = arith.constant 0 : index
    %7 = vector.load %arg5[%c0_8, %c0_9] : memref<1x128xf32, #tpu.memory_space<vmem>>, vector<1x128xf32>
    %c0_10 = arith.constant 0 : index
    %c0_11 = arith.constant 0 : index
    %8 = vector.load %arg6[%c0_10, %c0_11] : memref<128x128xbf16, #tpu.memory_space<vmem>>, vector<128x128xbf16>
    %c0_12 = arith.constant 0 : index
    %c0_13 = arith.constant 0 : index
    %9 = vector.load %arg7[%c0_12, %c0_13] : memref<1x128xf32, #tpu.memory_space<vmem>>, vector<1x128xf32>
    %c0_14 = arith.constant 0 : index
    %c0_15 = arith.constant 0 : index
    %10 = vector.load %arg8[%c0_14, %c0_15] : memref<128x32xbf16, #tpu.memory_space<vmem>>, vector<128x32xbf16>
    %c0_16 = arith.constant 0 : index
    %c0_17 = arith.constant 0 : index
    %11 = vector.load %arg9[%c0_16, %c0_17] : memref<1x32xf32, #tpu.memory_space<vmem>>, vector<1x32xf32>
    %12 = arith.truncf %3 : vector<64x32xf32> to vector<64x32xbf16>
    %cst = arith.constant dense<0.000000e+00> : vector<64x128xf32>
    %13 = tpu.matmul %12, %4, %cst {dimension_numbers = #tpu.dot_dimension_numbers<[1], [0], [0], [1], [0, 0, 1, 1], [], []>} : vector<64x32xbf16>, vector<32x128xbf16>, vector<64x128xf32> -> vector<64x128xf32>
    %14 = vector.broadcast %5 : vector<1x128xf32> to vector<64x128xf32>
    %15 = arith.addf %13, %14 : vector<64x128xf32>
    %16 = arith.negf %15 : vector<64x128xf32>
    %17 = math.exp %16 : vector<64x128xf32>
    %cst_18 = arith.constant 1.000000e+00 : f32
    %18 = vector.broadcast %cst_18 : f32 to vector<64x128xf32>
    %19 = arith.addf %18, %17 : vector<64x128xf32>
    %20 = arith.divf %18, %19 : vector<64x128xf32>
    %cst_19 = arith.constant 8.000000e-01 : f32
    %21 = vector.broadcast %cst_19 : f32 to vector<64x128xf32>
    %22 = arith.mulf %21, %20 : vector<64x128xf32>
    %cst_20 = arith.constant 2.000000e-01 : f32
    %23 = vector.broadcast %cst_20 : f32 to vector<64x128xf32>
    %24 = arith.addf %22, %23 : vector<64x128xf32>
    %25 = arith.mulf %15, %24 : vector<64x128xf32>
    %26 = arith.truncf %25 : vector<64x128xf32> to vector<64x128xbf16>
    %cst_21 = arith.constant dense<0.000000e+00> : vector<64x128xf32>
    %27 = tpu.matmul %26, %6, %cst_21 {dimension_numbers = #tpu.dot_dimension_numbers<[1], [0], [0], [1], [0, 0, 1, 1], [], []>} : vector<64x128xbf16>, vector<128x128xbf16>, vector<64x128xf32> -> vector<64x128xf32>
    %28 = vector.broadcast %7 : vector<1x128xf32> to vector<64x128xf32>
    %29 = arith.addf %27, %28 : vector<64x128xf32>
    %30 = arith.negf %29 : vector<64x128xf32>
    %31 = math.exp %30 : vector<64x128xf32>
    %cst_22 = arith.constant 1.000000e+00 : f32
    %32 = vector.broadcast %cst_22 : f32 to vector<64x128xf32>
    %33 = arith.addf %32, %31 : vector<64x128xf32>
    %34 = arith.divf %32, %33 : vector<64x128xf32>
    %cst_23 = arith.constant 8.000000e-01 : f32
    %35 = vector.broadcast %cst_23 : f32 to vector<64x128xf32>
    %36 = arith.mulf %35, %34 : vector<64x128xf32>
    %cst_24 = arith.constant 2.000000e-01 : f32
    %37 = vector.broadcast %cst_24 : f32 to vector<64x128xf32>
    %38 = arith.addf %36, %37 : vector<64x128xf32>
    %39 = arith.mulf %29, %38 : vector<64x128xf32>
    %40 = arith.truncf %39 : vector<64x128xf32> to vector<64x128xbf16>
    %cst_25 = arith.constant dense<0.000000e+00> : vector<64x128xf32>
    %41 = tpu.matmul %40, %8, %cst_25 {dimension_numbers = #tpu.dot_dimension_numbers<[1], [0], [0], [1], [0, 0, 1, 1], [], []>} : vector<64x128xbf16>, vector<128x128xbf16>, vector<64x128xf32> -> vector<64x128xf32>
    %42 = vector.broadcast %9 : vector<1x128xf32> to vector<64x128xf32>
    %43 = arith.addf %41, %42 : vector<64x128xf32>
    %44 = arith.negf %43 : vector<64x128xf32>
    %45 = math.exp %44 : vector<64x128xf32>
    %cst_26 = arith.constant 1.000000e+00 : f32
    %46 = vector.broadcast %cst_26 : f32 to vector<64x128xf32>
    %47 = arith.addf %46, %45 : vector<64x128xf32>
    %48 = arith.divf %46, %47 : vector<64x128xf32>
    %cst_27 = arith.constant 8.000000e-01 : f32
    %49 = vector.broadcast %cst_27 : f32 to vector<64x128xf32>
    %50 = arith.mulf %49, %48 : vector<64x128xf32>
    %cst_28 = arith.constant 2.000000e-01 : f32
    %51 = vector.broadcast %cst_28 : f32 to vector<64x128xf32>
    %52 = arith.addf %50, %51 : vector<64x128xf32>
    %53 = arith.mulf %43, %52 : vector<64x128xf32>
    %54 = arith.truncf %53 : vector<64x128xf32> to vector<64x128xbf16>
    %cst_29 = arith.constant dense<0.000000e+00> : vector<64x32xf32>
    %55 = tpu.matmul %54, %10, %cst_29 {dimension_numbers = #tpu.dot_dimension_numbers<[1], [0], [0], [1], [0, 0, 1, 1], [], []>} : vector<64x128xbf16>, vector<128x32xbf16>, vector<64x32xf32> -> vector<64x32xf32>
    %56 = vector.broadcast %11 : vector<1x32xf32> to vector<64x32xf32>
    %57 = arith.addf %55, %56 : vector<64x32xf32>
    %c64_i32 = arith.constant 64 : i32
    %58 = arith.muli %arg0, %c64_i32 : i32
    %59 = tpu.iota {dimensions = array<i32: 0>} : vector<64x1xi32>
    %60 = vector.broadcast %58 : i32 to vector<64x1xi32>
    %61 = arith.addi %60, %59 : vector<64x1xi32>
    %c0_30 = arith.constant 0 : index
    %c0_31 = arith.constant 0 : index
    %62 = vector.load %arg11[%c0_30, %c0_31] : memref<1x32xf32, #tpu.memory_space<vmem>>, vector<1x32xf32>
    %c64_i32_32 = arith.constant 64 : i32
    %63 = vector.broadcast %c64_i32_32 : i32 to vector<64x1xi32>
    %64 = arith.cmpi slt, %61, %63 : vector<64x1xi32>
    %cst_33 = arith.constant 0.000000e+00 : f32
    %65 = vector.shape_cast %64 : vector<64x1xi1> to vector<64x1xi1>
    %66 = vector.broadcast %65 : vector<64x1xi1> to vector<64x32xi1>
    %67 = vector.broadcast %cst_33 : f32 to vector<64x32xf32>
    %68 = arith.select %66, %57, %67 : vector<64x32xi1>, vector<64x32xf32>
    %cst_34 = arith.constant dense<0.000000e+00> : vector<32xf32>
    %69 = vector.multi_reduction <add>, %68, %cst_34 [0] : vector<64x32xf32> to vector<32xf32>
    %70 = vector.shape_cast %69 : vector<32xf32> to vector<1x32xf32>
    %71 = arith.addf %62, %70 : vector<1x32xf32>
    %c0_35 = arith.constant 0 : index
    %c0_36 = arith.constant 0 : index
    %72 = vector.load %arg11[%c0_35, %c0_36] : memref<1x32xf32, #tpu.memory_space<vmem>>, vector<1x32xf32>
    tpu.vector_store %arg11[%c0_35, %c0_36], %71 {strides = array<i32>} : memref<1x32xf32, #tpu.memory_space<vmem>>, vector<1x32xf32>,
    %c64_i32_37 = arith.constant 64 : i32
    %73 = arith.muli %arg0, %c64_i32_37 : i32
    %74 = tpu.assume_multiple %73, 8 : i32
    %75 = arith.index_cast %74 : i32 to index
    %c0_38 = arith.constant 0 : index
    %76 = vector.load %arg10[%75, %c0_38] : memref<64x32xf32, #tpu.memory_space<vmem>>, vector<64x32xf32>
    tpu.vector_store %arg10[%75, %c0_38], %57 {strides = array<i32>} : memref<64x32xf32, #tpu.memory_space<vmem>>, vector<64x32xf32>,
    %c0_i32_39 = arith.constant 0 : i32
    %77 = arith.cmpi eq, %arg0, %c0_i32_39 : i32
    %78 = arith.extui %77 : i1 to i32
    %c0_i32_40 = arith.constant 0 : i32
    %79 = arith.cmpi ne, %78, %c0_i32_40 : i32
    scf.if %79 {
      %c0_41 = arith.constant 0 : index
      %c0_42 = arith.constant 0 : index
      %80 = vector.load %arg11[%c0_41, %c0_42] : memref<1x32xf32, #tpu.memory_space<vmem>>, vector<1x32xf32>
      %cst_43 = arith.constant 1.562500e-02 : f32
      %81 = vector.broadcast %cst_43 : f32 to vector<1x32xf32>
      %82 = arith.mulf %80, %81 : vector<1x32xf32>
      %c0_44 = arith.constant 0 : index
      %c0_45 = arith.constant 0 : index
      %83 = vector.load %arg10[%c0_44, %c0_45] : memref<64x32xf32, #tpu.memory_space<vmem>>, vector<64x32xf32>
      %84 = tpu.iota {dimensions = array<i32: 0>} : vector<64x1xi32>
      %c64_i32_46 = arith.constant 64 : i32
      %85 = vector.broadcast %c64_i32_46 : i32 to vector<64x1xi32>
      %86 = arith.cmpi slt, %84, %85 : vector<64x1xi32>
      %87 = vector.broadcast %82 : vector<1x32xf32> to vector<64x32xf32>
      %88 = arith.subf %83, %87 : vector<64x32xf32>
      %cst_47 = arith.constant 0.000000e+00 : f32
      %89 = vector.shape_cast %86 : vector<64x1xi1> to vector<64x1xi1>
      %90 = vector.broadcast %89 : vector<64x1xi1> to vector<64x32xi1>
      %91 = vector.broadcast %cst_47 : f32 to vector<64x32xf32>
      %92 = arith.select %90, %88, %91 : vector<64x32xi1>, vector<64x32xf32>
      %93 = arith.mulf %92, %92 : vector<64x32xf32>
      %cst_48 = arith.constant dense<0.000000e+00> : vector<32xf32>
      %94 = vector.multi_reduction <add>, %93, %cst_48 [0] : vector<64x32xf32> to vector<32xf32>
      %95 = vector.shape_cast %94 : vector<32xf32> to vector<1x32xf32>
      %cst_49 = arith.constant 1.562500e-02 : f32
      %96 = vector.broadcast %cst_49 : f32 to vector<1x32xf32>
      %97 = arith.mulf %95, %96 : vector<1x32xf32>
      %cst_50 = arith.constant 9.99999974E-6 : f32
      %98 = vector.broadcast %cst_50 : f32 to vector<1x32xf32>
      %99 = arith.addf %97, %98 : vector<1x32xf32>
      %100 = math.rsqrt %99 : vector<1x32xf32>
      %101 = vector.broadcast %82 : vector<1x32xf32> to vector<64x32xf32>
      %102 = arith.subf %83, %101 : vector<64x32xf32>
      %103 = vector.broadcast %100 : vector<1x32xf32> to vector<64x32xf32>
      %104 = arith.mulf %102, %103 : vector<64x32xf32>
      %c0_51 = arith.constant 0 : index
      %c0_52 = arith.constant 0 : index
      %105 = vector.load %arg10[%c0_51, %c0_52] : memref<64x32xf32, #tpu.memory_space<vmem>>, vector<64x32xf32>
      tpu.vector_store %arg10[%c0_51, %c0_52], %104 {strides = array<i32>} : memref<64x32xf32, #tpu.memory_space<vmem>>, vector<64x32xf32>,
    } else {
    }
    return
  }
  func.func @transform_0(%arg0: i32) -> (i32, i32) {
    %c0_i32 = arith.constant 0 : i32
    %c0_i32_0 = arith.constant 0 : i32
    return %arg0, %c0_i32 : i32, i32
  }
  func.func @transform_1(%arg0: i32) -> (i32, i32) {
    %c0_i32 = arith.constant 0 : i32
    %c0_i32_0 = arith.constant 0 : i32
    %c0_i32_1 = arith.constant 0 : i32
    return %c0_i32, %c0_i32_0 : i32, i32
  }
  func.func @transform_2(%arg0: i32) -> (i32, i32) {
    %c0_i32 = arith.constant 0 : i32
    %c0_i32_0 = arith.constant 0 : i32
    %c0_i32_1 = arith.constant 0 : i32
    return %c0_i32, %c0_i32_0 : i32, i32
  }
  func.func @transform_3(%arg0: i32) -> (i32, i32) {
    %c0_i32 = arith.constant 0 : i32
    %c0_i32_0 = arith.constant 0 : i32
    %c0_i32_1 = arith.constant 0 : i32
    return %c0_i32, %c0_i32_0 : i32, i32
  }
  func.func @transform_4(%arg0: i32) -> (i32, i32) {
    %c0_i32 = arith.constant 0 : i32
    %c0_i32_0 = arith.constant 0 : i32
    %c0_i32_1 = arith.constant 0 : i32
    return %c0_i32, %c0_i32_0 : i32, i32
  }
  func.func @transform_5(%arg0: i32) -> (i32, i32) {
    %c0_i32 = arith.constant 0 : i32
    %c0_i32_0 = arith.constant 0 : i32
    %c0_i32_1 = arith.constant 0 : i32
    return %c0_i32, %c0_i32_0 : i32, i32
  }
  func.func @transform_6(%arg0: i32) -> (i32, i32) {
    %c0_i32 = arith.constant 0 : i32
    %c0_i32_0 = arith.constant 0 : i32
    %c0_i32_1 = arith.constant 0 : i32
    return %c0_i32, %c0_i32_0 : i32, i32
  }
  func.func @transform_7(%arg0: i32) -> (i32, i32) {
    %c0_i32 = arith.constant 0 : i32
    %c0_i32_0 = arith.constant 0 : i32
    %c0_i32_1 = arith.constant 0 : i32
    return %c0_i32, %c0_i32_0 : i32, i32
  }
  func.func @transform_8(%arg0: i32) -> (i32, i32) {
    %c0_i32 = arith.constant 0 : i32
    %c0_i32_0 = arith.constant 0 : i32
    %c0_i32_1 = arith.constant 0 : i32
    return %c0_i32, %c0_i32_0 : i32, i32
  }
  func.func @transform_9(%arg0: i32) -> (i32, i32) {
    %c0_i32 = arith.constant 0 : i32
    %c0_i32_0 = arith.constant 0 : i32
    %c0_i32_1 = arith.constant 0 : i32
    return %c0_i32, %c0_i32_0 : i32, i32
  }
}

</mosaic_0001>

<bundles_post_ra>
// kernel: tpu_custom_call.1
= control target key start
LH: loop header
LB: loop body
LE: loop exit
PB: predicated region body
PF: predicated region fallthrough
CT: control target
= control target key end

     0   :  { %vm125_vm0 = vcmask 261120   ;;  %vm37_vm1 = vcmask 253952   ;;  %s1628_s1 = inlined_call_operand.vmem [shape: bf16[32,128], index: 1, kind: input, shape index: {}]   ;;  %s1629_s0 = inlined_call_operand.vmem [shape: f32[64,32], index: 0, kind: input, shape index: {}]   ;;  %s1630_s3 = inlined_call_operand.vmem [shape: bf16[128,128], index: 3, kind: input, shape index: {}]   ;;  %s1631_s2 = inlined_call_operand.vmem [shape: f32[1,128], index: 2, kind: input, shape index: {}]   ;;  %s1632_s5 = inlined_call_operand.vmem [shape: bf16[128,128], index: 5, kind: input, shape index: {}]   ;;  %s1633_s4 = inlined_call_operand.vmem [shape: f32[1,128], index: 4, kind: input, shape index: {}]   ;;  %s1634_s7 = inlined_call_operand.vmem [shape: bf16[128,32], index: 7, kind: input, shape index: {}]   ;;  %s1635_s6 = inlined_call_operand.vmem [shape: f32[1,128], index: 6, kind: input, shape index: {}]   ;;  %s1636_s8 = inlined_call_operand.vmem [shape: f32[1,32], index: 8, kind: input, shape index: {}]   ;;  %s1637_s9 = inlined_call_operand.vmem [shape: f32[64,32], index: 9, kind: output, shape index: {}]  }
   0x1   :  { %v1169_v0 = vld [vmem:[%s1628_s1 + $0x8] sm:$0xff]   ;;  %v1170_v1 = vld [vmem:[%s1628_s1] sm:$0xff]   ;;  %v41_v5 = vld [vmem:[%s1629_s0 + $0x10] sm:$0xff] }
   0x2   :  { %1084 = vmatprep.subr.bf16.mxu0 %v1169_v0  ;;  %v39_v2 = vld [vmem:[%s1629_s0] sm:$0xff]  ;;  %v40_v3 = vld [vmem:[%s1629_s0 + $0x8] sm:$0xff]  ;;  %v42_v6 = vld [vmem:[%s1629_s0 + $0x18] sm:$0xff] }
   0x3   :  { %1085 = vmatpush3.bf16.msra.mxu0 %v1169_v0  ;;  %v103_v4 = vpack.c.bf16 %v40_v3, %v39_v2  ;;  %v43_v7 = vld [vmem:[%s1629_s0 + $0x20] sm:$0xff]  ;;  %v44_v8 = vld [vmem:[%s1629_s0 + $0x28] sm:$0xff]  ;;  %v104_v9 = vpack.c.bf16 %v42_v6, %v41_v5  ;;  %v45_v11 = vld [vmem:[%s1629_s0 + $0x30] sm:$0xff] }
   0x4   :  { %1086 = vmatprep.subr.bf16.mxu0 %v1170_v1  ;;  %v105_v10 = vpack.c.bf16 %v44_v8, %v43_v7  ;;  %v46_v12 = vld [vmem:[%s1629_s0 + $0x38] sm:$0xff]  ;;  %v1172_v15 = vld [vmem:[%s1630_s3 + $0x30] sm:$0xff]   ;;  %v1173_v16 = vld [vmem:[%s1630_s3 + $0x28] sm:$0xff]  }
   0x5   :  { %1088 = vmatprep.mubr.msk.bf16.mxu0 %vm125_vm0, %v103_v4  ;;  %v106_v13 = vpack.c.bf16 %v46_v12, %v45_v11  ;;  %v1171_v14 = vld [vmem:[%s1630_s3 + $0x38] sm:$0xff]   ;;  %v1174_v17 = vld [vmem:[%s1630_s3 + $0x20] sm:$0xff]   ;;  %v1176_v19 = vld [vmem:[%s1630_s3 + $0x10] sm:$0xff]  }
   0x6   :  { %1096 = vmatprep.subr.bf16.mxu1 %v1171_v14  ;;  %v1175_v18 = vld [vmem:[%s1630_s3 + $0x18] sm:$0xff]   ;;  %v1177_v20 = vld [vmem:[%s1630_s3 + $0x8] sm:$0xff]   ;;  %v1178_v21 = vld [vmem:[%s1630_s3] sm:$0xff]  }
   0x7   :  { %1087 = vmatpush3.bf16.msra.mxu0 %v1170_v1  ;;  %1097 = vmatpush3.bf16.msra.mxu1 %v1171_v14  ;;  %v984_v22 = vld [vmem:[%s1631_s2] ss:$0 sm:$0xff] }
   0x8   :  { %1098 = vmatprep.subr.bf16.mxu1 %v1172_v15 }
   0xa   :  { %1089 = vmatmul.mubr.msk.bf16.vlgmr.msra.gmra.mxu0 %vm125_vm0, %v104_v9 }
   0xb   :  { %1092 = vmatprep.mubr.msk.bf16.mxu0 %vm125_vm0, %v105_v10  ;;  %1099 = vmatpush3.bf16.msra.mxu1 %v1172_v15 }
   0xc   :  { %1100 = vmatprep.subr.bf16.mxu1 %v1173_v16 }
   0xf   :  { %1101 = vmatpush3.bf16.msra.mxu1 %v1173_v16 }
  0x10   :  { %1102 = vmatprep.subr.bf16.mxu1 %v1174_v17 }
  0x12   :  { %1093 = vmatmul.mubr.msk.bf16.gmra.mxu0 %vm125_vm0, %v106_v13 }
  0x13   :  { %1103 = vmatpush3.bf16.msra.mxu1 %v1174_v17 }
  0x14   :  { %1104 = vmatprep.subr.bf16.mxu1 %v1175_v18 }
  0x17   :  { %1105 = vmatpush3.bf16.msra.mxu1 %v1175_v18 }
  0x18   :  { %1106 = vmatprep.subr.bf16.mxu1 %v1176_v19 }
  0x1b   :  { %1107 = vmatpush3.bf16.msra.mxu1 %v1176_v19 }
  0x1c   :  { %1108 = vmatprep.subr.bf16.mxu1 %v1177_v20 }
  0x1f   :  { %1109 = vmatpush3.bf16.msra.mxu1 %v1177_v20 }
  0x20   :  { %1110 = vmatprep.subr.bf16.mxu1 %v1178_v21 }
  0x23   :  { %1111 = vmatpush3.bf16.msra.mxu1 %v1178_v21 }
  0xca   :  { %v1090_v23 = vpop.f32.mrf.mxu0 }
  0xcb   :  { %v1405_v24 = vadd.f32 %v1090_v23, %v984_v22 }
  0xcc   :  { %v172_v25 = vpop.f32.mrf.mxu0 }
  0xcd   :  { %v993_v26 = vmul.f32 -1.442695, %v1405_v24  ;;  %v1408_v27 = vadd.f32 %v984_v22, %v172_v25 }
  0xce   :  { %v1091_v28 = vpop.f32.mrf.mxu0 }
  0xcf   :  { %1195 = vpow2.f32 %v993_v26  ;;  %v991_v29 = vmul.f32 -1.442695, %v1408_v27  ;;  %v184_v30 = vadd.f32 %v1091_v28, %v984_v22 }
  0xd0   :  { %v175_v31 = vpop.f32.mrf.mxu0 }
  0xd1   :  { %1197 = vpow2.f32 %v991_v29  ;;  %v994_v32 = vmul.f32 -1.442695, %v184_v30  ;;  %v176_v33 = vadd.f32 %v984_v22, %v175_v31 }
  0xd2   :  { %v1094_v34 = vpop.f32.mrf.mxu0 }
  0xd3   :  { %1199 = vpow2.f32 %v994_v32  ;;  %v992_v35 = vmul.f32 -1.442695, %v176_v33  ;;  %v1411_v36 = vadd.f32 %v1094_v34, %v984_v22 }
  0xd4   :  { %v188_v37 = vpop.f32.mrf.mxu0 }
  0xd5   :  { %1201 = vpow2.f32 %v992_v35  ;;  %v997_v38 = vmul.f32 -1.442695, %v1411_v36  ;;  %v1414_v39 = vadd.f32 %v984_v22, %v188_v37  ;;  %v1179_v35 = vld [vmem:[%s1632_s5 + $0x38] sm:$0xff]   ;;  %v1180_v37 = vld [vmem:[%s1632_s5 + $0x30] sm:$0xff]  }
  0xd6   :  { %v1095_v40 = vpop.f32.mrf.mxu0  ;;  %1120 = vmatprep.subr.bf16.mxu0 %v1179_v35 }
  0xd7   :  { %1203 = vpow2.f32 %v997_v38  ;;  %v995_v41 = vmul.f32 -1.442695, %v1414_v39  ;;  %v1417_v42 = vadd.f32 %v1095_v40, %v984_v22  ;;  %1121 = vmatpush3.bf16.msra.mxu0 %v1179_v35  ;;  %v1182_v38 = vld [vmem:[%s1632_s5 + $0x20] sm:$0xff]   ;;  %v1184_v40 = vld [vmem:[%s1632_s5 + $0x10] sm:$0xff]  }
  0xd8   :  { %v191_v43 = vpop.f32.mrf.mxu0  ;;  %1122 = vmatprep.subr.bf16.mxu0 %v1180_v37 }
  0xd9   :  { %1205 = vpow2.f32 %v995_v41  ;;  %v998_v44 = vmul.f32 -1.442695, %v1417_v42  ;;  %v192_v45 = vadd.f32 %v984_v22, %v191_v43  ;;  %v1185_v41 = vld [vmem:[%s1632_s5 + $0x8] sm:$0xff]   ;;  %v999_v43 = vld [vmem:[%s1633_s4] ss:$0 sm:$0xff] }
  0xdb   :  { %1207 = vpow2.f32 %v998_v44  ;;  %v996_v46 = vmul.f32 -1.442695, %v192_v45  ;;  %1123 = vmatpush3.bf16.msra.mxu0 %v1180_v37 }
  0xdc   :  { %v1196_v47 = vpop.eup %1195 }
  0xdd   :  { %v229_v48 = vadd.f32 1.0, %v1196_v47  ;;  %1209 = vpow2.f32 %v996_v46 }
  0xde   :  { %v1198_v49 = vpop.eup %1197 }
  0xdf   :  { %v227_v50 = vadd.f32 1.0, %v1198_v49  ;;  %1211 = vrcp.f32 %v229_v48 }
  0xe0   :  { %v1200_v51 = vpop.eup %1199 }
  0xe1   :  { %1213 = vrcp.f32 %v227_v50  ;;  %v230_v52 = vadd.f32 1.0, %v1200_v51 }
  0xe2   :  { %v1202_v53 = vpop.eup %1201 }
  0xe3   :  { %1215 = vrcp.f32 %v230_v52  ;;  %v228_v54 = vadd.f32 1.0, %v1202_v53 }
  0xe4   :  { %v1204_v55 = vpop.eup %1203 }
  0xe5   :  { %1217 = vrcp.f32 %v228_v54  ;;  %v233_v56 = vadd.f32 1.0, %v1204_v55 }
  0xe6   :  { %v1206_v57 = vpop.eup %1205 }
  0xe7   :  { %v231_v58 = vadd.f32 1.0, %v1206_v57  ;;  %1219 = vrcp.f32 %v233_v56 }
  0xe8   :  { %v1208_v59 = vpop.eup %1207 }
  0xe9   :  { %1221 = vrcp.f32 %v231_v58  ;;  %v234_v60 = vadd.f32 1.0, %v1208_v59 }
  0xea   :  { %v1210_v61 = vpop.eup %1209 }
  0xeb   :  { %1223 = vrcp.f32 %v234_v60  ;;  %v232_v62 = vadd.f32 1.0, %v1210_v61 }
  0xec   :  { %v1212_v63 = vpop.eup %1211 }
  0xed   :  { %1225 = vrcp.f32 %v232_v62  ;;  %v253_v3 = vmul.f32 0.8, %v1212_v63 }
  0xee   :  { %v1214_v0 = vpop.eup %1213 }
  0xef   :  { %v251_v1 = vmul.f32 0.8, %v1214_v0  ;;  %v261_v9 = vadd.f32 0.2, %v253_v3 }
  0xf0   :  { %v1216_v2 = vpop.eup %1215 }
  0xf1   :  { %v254_v4 = vmul.f32 0.8, %v1216_v2  ;;  %v259_v8 = vadd.f32 0.2, %v251_v1  ;;  %v269_v18 = vmul.f32 %v261_v9, %v1405_v24 }
  0xf2   :  { %v1218_v5 = vpop.eup %1217 }
  0xf3   :  { %v262_v6 = vadd.f32 0.2, %v254_v4  ;;  %v252_v7 = vmul.f32 0.8, %v1218_v5  ;;  %v267_v15 = vmul.f32 %v259_v8, %v1408_v27 }
  0xf4   :  { %v1220_v10 = vpop.eup %1219 }
  0xf5   :  { %v260_v11 = vadd.f32 0.2, %v252_v7  ;;  %v270_v13 = vmul.f32 %v262_v6, %v184_v30  ;;  %v257_v19 = vmul.f32 0.8, %v1220_v10 }
  0xf6   :  { %v1222_v12 = vpop.eup %1221 }
  0xf7   :  { %v255_v14 = vmul.f32 0.8, %v1222_v12  ;;  %v268_v16 = vmul.f32 %v260_v11, %v176_v33  ;;  %v276_v23 = vpack.c.bf16 %v270_v13, %v269_v18  ;;  %v265_v29 = vadd.f32 0.2, %v257_v19 }
  0xf8   :  { %v1224_v17 = vpop.eup %1223 }
  0xf9   :  { %v258_v20 = vmul.f32 0.8, %v1224_v17  ;;  %v275_v21 = vpack.c.bf16 %v268_v16, %v267_v15  ;;  %v263_v25 = vadd.f32 0.2, %v255_v14  ;;  %v273_v33 = vmul.f32 %v265_v29, %v1411_v36  ;;  %v1181_v36 = vld [vmem:[%s1632_s5 + $0x28] sm:$0xff]  }
  0xfa   :  { %v1226_v22 = vpop.eup %1225  ;;  %1124 = vmatprep.subr.bf16.mxu0 %v1181_v36 }
  0xfb   :  { %v266_v26 = vadd.f32 0.2, %v258_v20  ;;  %v256_v28 = vmul.f32 0.8, %v1226_v22  ;;  %1112 = vmatprep.mubr.bf16.mxu1 %v275_v21  ;;  %v271_v27 = vmul.f32 %v263_v25, %v1414_v39  ;;  %1125 = vmatpush3.bf16.msra.mxu0 %v1181_v36  ;;  %v1183_v39 = vld [vmem:[%s1632_s5 + $0x18] sm:$0xff]  }
  0xfc   :  { %1113 = vmatmul.mubr.bf16.vlgmr.msra.gmra.mxu1 %v276_v23  ;;  %1126 = vmatprep.subr.bf16.mxu0 %v1182_v38 }
  0xfd   :  { %v264_v31 = vadd.f32 0.2, %v256_v28  ;;  %v274_v30 = vmul.f32 %v266_v26, %v1417_v42  ;;  %v1186_v42 = vld [vmem:[%s1632_s5] sm:$0xff]  }
  0xff   :  { %v272_v32 = vmul.f32 %v264_v31, %v192_v45  ;;  %v278_v34 = vpack.c.bf16 %v274_v30, %v273_v33  ;;  %1127 = vmatpush3.bf16.msra.mxu0 %v1182_v38 }
 0x100   :  { %1128 = vmatprep.subr.bf16.mxu0 %v1183_v39 }
 0x101   :  { %v277_v24 = vpack.c.bf16 %v272_v32, %v271_v27 }
 0x103   :  { %1116 = vmatprep.mubr.bf16.mxu1 %v277_v24  ;;  %1129 = vmatpush3.bf16.msra.mxu0 %v1183_v39 }
 0x104   :  { %1117 = vmatmul.mubr.bf16.gmra.mxu1 %v278_v34  ;;  %1130 = vmatprep.subr.bf16.mxu0 %v1184_v40 }
 0x107   :  { %1131 = vmatpush3.bf16.msra.mxu0 %v1184_v40 }
 0x108   :  { %1132 = vmatprep.subr.bf16.mxu0 %v1185_v41 }
 0x10b   :  { %1133 = vmatpush3.bf16.msra.mxu0 %v1185_v41 }
 0x10c   :  { %1134 = vmatprep.subr.bf16.mxu0 %v1186_v42 }
 0x10f   :  { %1135 = vmatpush3.bf16.msra.mxu0 %v1186_v42 }
 0x1bc   :  { %v1114_v44 = vpop.f32.mrf.mxu1 }
 0x1bd   :  { %v1452_v45 = vadd.f32 %v1114_v44, %v999_v43 }
 0x1be   :  { %v367_v46 = vpop.f32.mrf.mxu1 }
 0x1bf   :  { %v1010_v47 = vmul.f32 -1.442695, %v1452_v45  ;;  %v1455_v48 = vadd.f32 %v999_v43, %v367_v46 }
 0x1c0   :  { %v1115_v49 = vpop.f32.mrf.mxu1 }
 0x1c1   :  { %1227 = vpow2.f32 %v1010_v47  ;;  %v1008_v50 = vmul.f32 -1.442695, %v1455_v48  ;;  %v379_v51 = vadd.f32 %v1115_v49, %v999_v43 }
 0x1c2   :  { %v370_v52 = vpop.f32.mrf.mxu1 }
 0x1c3   :  { %1229 = vpow2.f32 %v1008_v50  ;;  %v1011_v53 = vmul.f32 -1.442695, %v379_v51  ;;  %v371_v54 = vadd.f32 %v999_v43, %v370_v52 }
 0x1c4   :  { %v1118_v55 = vpop.f32.mrf.mxu1 }
 0x1c5   :  { %1231 = vpow2.f32 %v1011_v53  ;;  %v1009_v56 = vmul.f32 -1.442695, %v371_v54  ;;  %v1458_v57 = vadd.f32 %v1118_v55, %v999_v43 }
 0x1c6   :  { %v383_v58 = vpop.f32.mrf.mxu1 }
 0x1c7   :  { %1233 = vpow2.f32 %v1009_v56  ;;  %v1014_v59 = vmul.f32 -1.442695, %v1458_v57  ;;  %v1461_v60 = vadd.f32 %v999_v43, %v383_v58  ;;  %v1187_v56 = vld [vmem:[%s1634_s7 + $0x38] sm:$0xff]   ;;  %v1188_v58 = vld [vmem:[%s1634_s7 + $0x30] sm:$0xff]  }
 0x1c8   :  { %v1119_v61 = vpop.f32.mrf.mxu1  ;;  %1144 = vmatprep.subr.bf16.mxu1 %v1187_v56 }
 0x1c9   :  { %1235 = vpow2.f32 %v1014_v59  ;;  %v1012_v62 = vmul.f32 -1.442695, %v1461_v60  ;;  %v1464_v63 = vadd.f32 %v1119_v61, %v999_v43  ;;  %1145 = vmatpush3.bf16.msra.mxu1 %v1187_v56  ;;  %v1190_v59 = vld [vmem:[%s1634_s7 + $0x20] sm:$0xff]   ;;  %v1192_v61 = vld [vmem:[%s1634_s7 + $0x10] sm:$0xff]  }
 0x1ca   :  { %v386_v0 = vpop.f32.mrf.mxu1  ;;  %1146 = vmatprep.subr.bf16.mxu1 %v1188_v58 }
 0x1cb   :  { %1237 = vpow2.f32 %v1012_v62  ;;  %v1015_v1 = vmul.f32 -1.442695, %v1464_v63  ;;  %v387_v2 = vadd.f32 %v999_v43, %v386_v0  ;;  %v1193_v62 = vld [vmem:[%s1634_s7 + $0x8] sm:$0xff]   ;;  %v1016_v0 = vld [vmem:[%s1635_s6] ss:$0 sm:$0xff] }
 0x1cd   :  { %1239 = vpow2.f32 %v1015_v1  ;;  %v1013_v3 = vmul.f32 -1.442695, %v387_v2  ;;  %1147 = vmatpush3.bf16.msra.mxu1 %v1188_v58 }
 0x1ce   :  { %v1228_v4 = vpop.eup %1227 }
 0x1cf   :  { %v424_v5 = vadd.f32 1.0, %v1228_v4  ;;  %1241 = vpow2.f32 %v1013_v3 }
 0x1d0   :  { %v1230_v6 = vpop.eup %1229 }
 0x1d1   :  { %v422_v7 = vadd.f32 1.0, %v1230_v6  ;;  %1243 = vrcp.f32 %v424_v5 }
 0x1d2   :  { %v1232_v8 = vpop.eup %1231 }
 0x1d3   :  { %1245 = vrcp.f32 %v422_v7  ;;  %v425_v9 = vadd.f32 1.0, %v1232_v8 }
 0x1d4   :  { %v1234_v10 = vpop.eup %1233 }
 0x1d5   :  { %1247 = vrcp.f32 %v425_v9  ;;  %v423_v11 = vadd.f32 1.0, %v1234_v10 }
 0x1d6   :  { %v1236_v12 = vpop.eup %1235 }
 0x1d7   :  { %1249 = vrcp.f32 %v423_v11  ;;  %v428_v13 = vadd.f32 1.0, %v1236_v12 }
 0x1d8   :  { %v1238_v14 = vpop.eup %1237 }
 0x1d9   :  { %v426_v15 = vadd.f32 1.0, %v1238_v14  ;;  %1251 = vrcp.f32 %v428_v13 }
 0x1da   :  { %v1240_v16 = vpop.eup %1239 }
 0x1db   :  { %1253 = vrcp.f32 %v426_v15  ;;  %v429_v17 = vadd.f32 1.0, %v1240_v16 }
 0x1dc   :  { %v1242_v18 = vpop.eup %1241 }
 0x1dd   :  { %1255 = vrcp.f32 %v429_v17  ;;  %v427_v19 = vadd.f32 1.0, %v1242_v18 }
 0x1de   :  { %v1244_v20 = vpop.eup %1243 }
 0x1df   :  { %1257 = vrcp.f32 %v427_v19  ;;  %v448_v25 = vmul.f32 0.8, %v1244_v20 }
 0x1e0   :  { %v1246_v21 = vpop.eup %1245 }
 0x1e1   :  { %v446_v22 = vmul.f32 0.8, %v1246_v21  ;;  %v456_v27 = vadd.f32 0.2, %v448_v25 }
 0x1e2   :  { %v1248_v23 = vpop.eup %1247 }
 0x1e3   :  { %v449_v26 = vmul.f32 0.8, %v1248_v23  ;;  %v454_v29 = vadd.f32 0.2, %v446_v22  ;;  %v464_v39 = vmul.f32 %v456_v27, %v1452_v45 }
 0x1e4   :  { %v1250_v28 = vpop.eup %1249 }
 0x1e5   :  { %v457_v31 = vadd.f32 0.2, %v449_v26  ;;  %v447_v30 = vmul.f32 0.8, %v1250_v28  ;;  %v462_v35 = vmul.f32 %v454_v29, %v1455_v48 }
 0x1e6   :  { %v1252_v32 = vpop.eup %1251 }
 0x1e7   :  { %v455_v33 = vadd.f32 0.2, %v447_v30  ;;  %v465_v34 = vmul.f32 %v457_v31, %v379_v51  ;;  %v452_v40 = vmul.f32 0.8, %v1252_v32 }
 0x1e8   :  { %v1254_v24 = vpop.eup %1253 }
 0x1e9   :  { %v463_v37 = vmul.f32 %v455_v33, %v371_v54  ;;  %v450_v36 = vmul.f32 0.8, %v1254_v24  ;;  %v471_v44 = vpack.c.bf16 %v465_v34, %v464_v39  ;;  %v460_v50 = vadd.f32 0.2, %v452_v40 }
 0x1ea   :  { %v1256_v38 = vpop.eup %1255 }
 0x1eb   :  { %v453_v41 = vmul.f32 0.8, %v1256_v38  ;;  %v470_v42 = vpack.c.bf16 %v463_v37, %v462_v35  ;;  %v458_v46 = vadd.f32 0.2, %v450_v36  ;;  %v468_v54 = vmul.f32 %v460_v50, %v1458_v57  ;;  %v1189_v57 = vld [vmem:[%s1634_s7 + $0x28] sm:$0xff]  }
 0x1ec   :  { %v1258_v43 = vpop.eup %1257  ;;  %1148 = vmatprep.subr.bf16.mxu1 %v1189_v57 }
 0x1ed   :  { %v461_v47 = vadd.f32 0.2, %v453_v41  ;;  %v451_v49 = vmul.f32 0.8, %v1258_v43  ;;  %1136 = vmatprep.mubr.bf16.mxu0 %v470_v42  ;;  %v466_v48 = vmul.f32 %v458_v46, %v1461_v60  ;;  %1149 = vmatpush3.bf16.msra.mxu1 %v1189_v57  ;;  %v1191_v60 = vld [vmem:[%s1634_s7 + $0x18] sm:$0xff]  }
 0x1ee   :  { %1137 = vmatmul.mubr.bf16.vlgmr.msra.gmra.mxu0 %v471_v44  ;;  %1150 = vmatprep.subr.bf16.mxu1 %v1190_v59 }
 0x1ef   :  { %v459_v52 = vadd.f32 0.2, %v451_v49  ;;  %v469_v51 = vmul.f32 %v461_v47, %v1464_v63  ;;  %v1194_v63 = vld [vmem:[%s1634_s7] sm:$0xff]  }
 0x1f1   :  { %v467_v53 = vmul.f32 %v459_v52, %v387_v2  ;;  %v473_v55 = vpack.c.bf16 %v469_v51, %v468_v54  ;;  %1151 = vmatpush3.bf16.msra.mxu1 %v1190_v59 }
 0x1f2   :  { %1152 = vmatprep.subr.bf16.mxu1 %v1191_v60 }
 0x1f3   :  { %v472_v45 = vpack.c.bf16 %v467_v53, %v466_v48 }
 0x1f5   :  { %1140 = vmatprep.mubr.bf16.mxu0 %v472_v45  ;;  %1153 = vmatpush3.bf16.msra.mxu1 %v1191_v60 }
 0x1f6   :  { %1141 = vmatmul.mubr.bf16.gmra.mxu0 %v473_v55  ;;  %1154 = vmatprep.subr.bf16.mxu1 %v1192_v61 }
 0x1f9   :  { %1155 = vmatpush3.bf16.msra.mxu1 %v1192_v61 }
 0x1fa   :  { %1156 = vmatprep.subr.bf16.mxu1 %v1193_v62 }
 0x1fd   :  { %1157 = vmatpush3.bf16.msra.mxu1 %v1193_v62 }
 0x1fe   :  { %1158 = vmatprep.subr.bf16.mxu1 %v1194_v63 }
 0x201   :  { %1159 = vmatpush3.bf16.msra.mxu1 %v1194_v63 }
 0x2ae   :  { %v1138_v1 = vpop.f32.mrf.mxu0 }
 0x2af   :  { %v1499_v2 = vadd.f32 %v1138_v1, %v1016_v0 }
 0x2b0   :  { %v562_v3 = vpop.f32.mrf.mxu0 }
 0x2b1   :  { %v1027_v4 = vmul.f32 -1.442695, %v1499_v2  ;;  %v1502_v5 = vadd.f32 %v1016_v0, %v562_v3 }
 0x2b2   :  { %v1139_v6 = vpop.f32.mrf.mxu0 }
 0x2b3   :  { %1259 = vpow2.f32 %v1027_v4  ;;  %v1025_v7 = vmul.f32 -1.442695, %v1502_v5  ;;  %v574_v8 = vadd.f32 %v1139_v6, %v1016_v0 }
 0x2b4   :  { %v565_v9 = vpop.f32.mrf.mxu0 }
 0x2b5   :  { %1261 = vpow2.f32 %v1025_v7  ;;  %v1028_v10 = vmul.f32 -1.442695, %v574_v8  ;;  %v566_v11 = vadd.f32 %v1016_v0, %v565_v9 }
 0x2b6   :  { %v1142_v12 = vpop.f32.mrf.mxu0 }
 0x2b7   :  { %1263 = vpow2.f32 %v1028_v10  ;;  %v1026_v13 = vmul.f32 -1.442695, %v566_v11  ;;  %v1505_v14 = vadd.f32 %v1142_v12, %v1016_v0 }
 0x2b8   :  { %v578_v15 = vpop.f32.mrf.mxu0 }
 0x2b9   :  { %1265 = vpow2.f32 %v1026_v13  ;;  %v1031_v16 = vmul.f32 -1.442695, %v1505_v14  ;;  %v1508_v17 = vadd.f32 %v1016_v0, %v578_v15  ;;  %v1293_v13 = vmov 0.0   ;;  %v1033_v15 = vld [vmem:[%s1636_s8] ss:$0 sm:$0xff] }
 0x2ba   :  { %v1143_v18 = vpop.f32.mrf.mxu0  ;;  %38 = vst.msk [vmem:[#allocation2] sm:$0x1] %vm37_vm1, %v1293_v13 }
 0x2bb   :  { %1267 = vpow2.f32 %v1031_v16  ;;  %v1029_v19 = vmul.f32 -1.442695, %v1508_v17  ;;  %v1511_v20 = vadd.f32 %v1143_v18, %v1016_v0 }
 0x2bc   :  { %v581_v21 = vpop.f32.mrf.mxu0 }
 0x2bd   :  { %1269 = vpow2.f32 %v1029_v19  ;;  %v1032_v22 = vmul.f32 -1.442695, %v1511_v20  ;;  %v582_v23 = vadd.f32 %v1016_v0, %v581_v21 }
 0x2bf   :  { %1271 = vpow2.f32 %v1032_v22  ;;  %v1030_v25 = vmul.f32 -1.442695, %v582_v23 }
 0x2c0   :  { %v1260_v26 = vpop.eup %1259 }
 0x2c1   :  { %v619_v28 = vadd.f32 1.0, %v1260_v26  ;;  %1273 = vpow2.f32 %v1030_v25 }
 0x2c2   :  { %v1262_v29 = vpop.eup %1261 }
 0x2c3   :  { %v617_v31 = vadd.f32 1.0, %v1262_v29  ;;  %1275 = vrcp.f32 %v619_v28 }
 0x2c4   :  { %v1264_v30 = vpop.eup %1263 }
 0x2c5   :  { %1277 = vrcp.f32 %v617_v31  ;;  %v620_v27 = vadd.f32 1.0, %v1264_v30 }
 0x2c6   :  { %v1266_v32 = vpop.eup %1265 }
 0x2c7   :  { %1279 = vrcp.f32 %v620_v27  ;;  %v618_v33 = vadd.f32 1.0, %v1266_v32 }
 0x2c8   :  { %v1268_v24 = vpop.eup %1267 }
 0x2c9   :  { %1281 = vrcp.f32 %v618_v33  ;;  %v623_v34 = vadd.f32 1.0, %v1268_v24 }
 0x2ca   :  { %v1270_v35 = vpop.eup %1269 }
 0x2cb   :  { %v621_v37 = vadd.f32 1.0, %v1270_v35  ;;  %1283 = vrcp.f32 %v623_v34 }
 0x2cc   :  { %v1272_v36 = vpop.eup %1271 }
 0x2cd   :  { %1285 = vrcp.f32 %v621_v37  ;;  %v624_v38 = vadd.f32 1.0, %v1272_v36 }
 0x2ce   :  { %v1274_v39 = vpop.eup %1273 }
 0x2cf   :  { %1287 = vrcp.f32 %v624_v38  ;;  %v622_v40 = vadd.f32 1.0, %v1274_v39 }
 0x2d0   :  { %v1276_v41 = vpop.eup %1275 }
 0x2d1   :  { %1289 = vrcp.f32 %v622_v40  ;;  %v643_v46 = vmul.f32 0.8, %v1276_v41 }
 0x2d2   :  { %v1278_v42 = vpop.eup %1277 }
 0x2d3   :  { %v641_v43 = vmul.f32 0.8, %v1278_v42  ;;  %v651_v48 = vadd.f32 0.2, %v643_v46 }
 0x2d4   :  { %v1280_v44 = vpop.eup %1279 }
 0x2d5   :  { %v644_v47 = vmul.f32 0.8, %v1280_v44  ;;  %v649_v50 = vadd.f32 0.2, %v641_v43  ;;  %v659_v60 = vmul.f32 %v651_v48, %v1499_v2  ;;  %v807_v48 = vld [vmem:[#allocation2] sm:$0x1] }
 0x2d6   :  { %v1282_v49 = vpop.eup %1281 }
 0x2d7   :  { %v652_v52 = vadd.f32 0.2, %v644_v47  ;;  %v642_v51 = vmul.f32 0.8, %v1282_v49  ;;  %v657_v56 = vmul.f32 %v649_v50, %v1502_v5 }
 0x2d8   :  { %v1284_v53 = vpop.eup %1283 }
 0x2d9   :  { %v650_v54 = vadd.f32 0.2, %v642_v51  ;;  %v660_v55 = vmul.f32 %v652_v52, %v574_v8  ;;  %v647_v61 = vmul.f32 0.8, %v1284_v53 }
 0x2da   :  { %v1286_v45 = vpop.eup %1285 }
 0x2db   :  { %v658_v58 = vmul.f32 %v650_v54, %v566_v11  ;;  %v645_v57 = vmul.f32 0.8, %v1286_v45  ;;  %v666_v1 = vpack.c.bf16 %v660_v55, %v659_v60  ;;  %v655_v7 = vadd.f32 0.2, %v647_v61 }
 0x2dc   :  { %v1288_v59 = vpop.eup %1287  ;;  %v895_v45 = vlaneseq }
 0x2dd   :  { %v648_v62 = vmul.f32 0.8, %v1288_v59  ;;  %v665_v63 = vpack.c.bf16 %v658_v58, %v657_v56  ;;  %v653_v3 = vadd.f32 0.2, %v645_v57  ;;  %v663_v11 = vmul.f32 %v655_v7, %v1505_v14 }
 0x2de   :  { %v1290_v0 = vpop.eup %1289  ;;  %v896_v55 = vshrl.u32 %v895_v45, 7 }
 0x2df   :  { %v656_v4 = vadd.f32 0.2, %v648_v62  ;;  %v646_v6 = vmul.f32 0.8, %v1290_v0  ;;  %1160 = vmatprep.mubr.bf16.mxu1 %v665_v63  ;;  %v661_v5 = vmul.f32 %v653_v3, %v1508_v17 }
 0x2e0   :  { %1161 = vmatmul.mubr.bf16.vlgmr.msra.gmra.mxu1 %v666_v1  ;;  %v897_v56 = vsub.s32 0, %v896_v55 }
 0x2e1   :  { %v654_v9 = vadd.f32 0.2, %v646_v6  ;;  %v664_v8 = vmul.f32 %v656_v4, %v1511_v20 }
 0x2e3   :  { %v662_v10 = vmul.f32 %v654_v9, %v582_v23  ;;  %v668_v12 = vpack.c.bf16 %v664_v8, %v663_v11 }
 0x2e5   :  { %v667_v2 = vpack.c.bf16 %v662_v10, %v661_v5 }
 0x2e7   :  { %1164 = vmatprep.mubr.bf16.mxu1 %v667_v2 }
 0x2e8   :  { %1165 = vmatmul.mubr.bf16.gmra.mxu1 %v668_v12 }
 0x3a0   :  { %v1162_v16 = vpop.f32.mrf.mxu1 }
 0x3a1   :  { %v766_v18 = vadd.f32 %v1162_v16, %v1033_v15 }
 0x3a2   :  { %v757_v19 = vpop.f32.mrf.mxu1 }
 0x3a3   :  { %867 = vst.msk [vmem:[%s1637_s9 + $0x10] sm:$0xff] %vm125_vm0, %v766_v18  ;;  %v758_v14 = vadd.f32 %v1033_v15, %v757_v19  ;;  %v843_v30 = vsel %vm125_vm0, %v766_v18, 0.0 }
 0x3a4   :  { %v1163_v17 = vpop.f32.mrf.mxu1 }
 0x3a5   :  { %865 = vst.msk [vmem:[%s1637_s9] sm:$0xff] %vm125_vm0, %v758_v14  ;;  %v769_v20 = vadd.f32 %v1163_v17, %v1033_v15  ;;  %v840_v25 = vsel %vm125_vm0, %v758_v14, 0.0 }
 0x3a6   :  { %v760_v21 = vpop.f32.mrf.mxu1 }
 0x3a7   :  { %868 = vst.msk [vmem:[%s1637_s9 + $0x18] sm:$0xff] %vm125_vm0, %v769_v20  ;;  %v761_v22 = vadd.f32 %v1033_v15, %v760_v21  ;;  %v845_v24 = vsel %vm125_vm0, %v769_v20, 0.0 }
 0x3a8   :  { %v1166_v23 = vpop.f32.mrf.mxu1 }
 0x3a9   :  { %v841_v26 = vsel %vm125_vm0, %v761_v22, 0.0  ;;  %866 = vst.msk [vmem:[%s1637_s9 + $0x8] sm:$0xff] %vm125_vm0, %v761_v22  ;;  %v782_v28 = vadd.f32 %v1166_v23, %v1033_v15 }
 0x3aa   :  { %v842_v29 = vadd.f32 %v841_v26, %v840_v25  ;;  %v773_v31 = vpop.f32.mrf.mxu1  ;;  %v880_v59 = vld [vmem:[%s1637_s9 + $0x10] sm:$0xff] }
 0x3ab   :  { %871 = vst.msk [vmem:[%s1637_s9 + $0x30] sm:$0xff] %vm125_vm0, %v782_v28  ;;  %v774_v27 = vadd.f32 %v1033_v15, %v773_v31  ;;  %v851_v42 = vsel %vm125_vm0, %v782_v28, 0.0 }
 0x3ac   :  { %v844_v32 = vadd.f32 %v843_v30, %v842_v29  ;;  %v1167_v33 = vpop.f32.mrf.mxu1  ;;  %v878_v61 = vld [vmem:[%s1637_s9] sm:$0xff] }
 0x3ad   :  { %869 = vst.msk [vmem:[%s1637_s9 + $0x20] sm:$0xff] %vm125_vm0, %v774_v27  ;;  %v785_v34 = vadd.f32 %v1167_v33, %v1033_v15  ;;  %v847_v36 = vsel %vm125_vm0, %v774_v27, 0.0 }
 0x3ae   :  { %v846_v35 = vadd.f32 %v845_v24, %v844_v32  ;;  %v776_v37 = vpop.f32.mrf.mxu1  ;;  %v881_v63 = vld [vmem:[%s1637_s9 + $0x18] sm:$0xff] }
 0x3af   :  { %872 = vst.msk [vmem:[%s1637_s9 + $0x38] sm:$0xff] %vm125_vm0, %v785_v34  ;;  %v777_v38 = vadd.f32 %v1033_v15, %v776_v37  ;;  %v853_v44 = vsel %vm125_vm0, %v785_v34, 0.0 }
 0x3b0   :  { %v848_v39 = vadd.f32 %v847_v36, %v846_v35  ;;  %v879_v62 = vld [vmem:[%s1637_s9 + $0x8] sm:$0xff] }
 0x3b1   :  { %v849_v40 = vsel %vm125_vm0, %v777_v38, 0.0  ;;  %870 = vst.msk [vmem:[%s1637_s9 + $0x28] sm:$0xff] %vm125_vm0, %v777_v38 }
 0x3b2   :  { %v850_v41 = vadd.f32 %v849_v40, %v848_v39  ;;  %v884_v15 = vld [vmem:[%s1637_s9 + $0x30] sm:$0xff] }
 0x3b4   :  { %v852_v43 = vadd.f32 %v851_v42, %v850_v41  ;;  %v882_v6 = vld [vmem:[%s1637_s9 + $0x20] sm:$0xff] }
 0x3b6   :  { %v854_v46 = vadd.f32 %v853_v44, %v852_v43  ;;  %v885_v17 = vld [vmem:[%s1637_s9 + $0x38] sm:$0xff] }
 0x3b8   :  { %v855_v47 = vrot.slane %v854_v46, 4  ;;  %v883_v10 = vld [vmem:[%s1637_s9 + $0x28] sm:$0xff] }
 0x3ba   :  { %v856_v49 = vadd.f32 %v855_v47, %v854_v46 }
 0x3bc   :  { %v857_v50 = vrot.slane %v856_v49, 2 }
 0x3be   :  { %v858_v52 = vadd.f32 %v857_v50, %v856_v49 }
 0x3c0   :  { %v859_v51 = vrot.slane %v858_v52, 1 }
 0x3c2   :  { %v860_v53 = vadd.f32 %v859_v51, %v858_v52 }
 0x3c4   :  { %v861_v54 = vadd.f32 %v860_v53, %v807_v48 }
 0x3c6   :  { %863 = vst.msk [vmem:[#allocation2] sm:$0x1] %vm37_vm1, %v861_v54 }
 0x3cd   :  { %v876_v58 = vld [vmem:[#allocation2] sm:$0x1] }
 0x3ce   :  { %v877_v57 = vmul.f32 0.015625, %v876_v58 }
 0x3d0   :  { %v898_v60 = vrot.slane %v877_v57, %v897_v56 }
 0x3d2   :  { %v900_v0 = vsub.f32 %v878_v61, %v898_v60  ;;  %v901_v1 = vsub.f32 %v879_v62, %v898_v60  ;;  %v902_v3 = vsub.f32 %v880_v59, %v898_v60  ;;  %v903_v4 = vsub.f32 %v881_v63, %v898_v60 }
 0x3d3   :  { %v904_v7 = vsub.f32 %v882_v6, %v898_v60  ;;  %v905_v11 = vsub.f32 %v883_v10, %v898_v60  ;;  %v906_v18 = vsub.f32 %v884_v15, %v898_v60  ;;  %v907_v21 = vsub.f32 %v885_v17, %v898_v60 }
 0x3d4   :  { %v932_v9 = vmul.f32 %v900_v0, %v900_v0  ;;  %v933_v8 = vmul.f32 %v901_v1, %v901_v1  ;;  %v934_v5 = vmul.f32 %v902_v3, %v902_v3  ;;  %v935_v2 = vmul.f32 %v903_v4, %v903_v4 }
 0x3d5   :  { %v936_v19 = vmul.f32 %v904_v7, %v904_v7  ;;  %v937_v22 = vmul.f32 %v905_v11, %v905_v11  ;;  %v938_v26 = vmul.f32 %v906_v18, %v906_v18  ;;  %v939_v31 = vmul.f32 %v907_v21, %v907_v21 }
 0x3d6   :  { %v940_v12 = vsel %vm125_vm0, %v932_v9, 0.0  ;;  %v941_v13 = vsel %vm125_vm0, %v933_v8, 0.0  ;;  %v943_v14 = vsel %vm125_vm0, %v934_v5, 0.0  ;;  %v945_v23 = vsel %vm125_vm0, %v935_v2, 0.0 }
 0x3d7   :  { %v942_v16 = vadd.f32 %v941_v13, %v940_v12  ;;  %v947_v28 = vsel %vm125_vm0, %v936_v19, 0.0  ;;  %v949_v30 = vsel %vm125_vm0, %v937_v22, 0.0  ;;  %v951_v32 = vsel %vm125_vm0, %v938_v26, 0.0 }
 0x3d8   :  { %v953_v24 = vsel %vm125_vm0, %v939_v31, 0.0 }
 0x3d9   :  { %v944_v20 = vadd.f32 %v943_v14, %v942_v16 }
 0x3db   :  { %v946_v25 = vadd.f32 %v945_v23, %v944_v20 }
 0x3dd   :  { %v948_v29 = vadd.f32 %v947_v28, %v946_v25 }
 0x3df   :  { %v950_v27 = vadd.f32 %v949_v30, %v948_v29 }
 0x3e1   :  { %v952_v33 = vadd.f32 %v951_v32, %v950_v27 }
 0x3e3   :  { %v954_v34 = vadd.f32 %v953_v24, %v952_v33 }
 0x3e5   :  { %v955_v35 = vrot.slane %v954_v34, 4 }
 0x3e7   :  { %v956_v37 = vadd.f32 %v955_v35, %v954_v34 }
 0x3e9   :  { %v957_v36 = vrot.slane %v956_v37, 2 }
 0x3eb   :  { %v958_v38 = vadd.f32 %v957_v36, %v956_v37 }
 0x3ed   :  { %v959_v39 = vrot.slane %v958_v38, 1 }
 0x3ef   :  { %v960_v40 = vadd.f32 %v959_v39, %v958_v38 }
 0x3f1   :  { %v961_v41 = vmul.f32 0.015625, %v960_v40 }
 0x3f3   :  { %v962_v42 = vadd.f32 1e-05, %v961_v41 }
 0x3f5   :  { %1291 = vrsqrt.f32 %v962_v42 }
 0x402   :  { %v1292_v43 = vpop.eup %1291 }
 0x403   :  { %v964_v44 = vmul.f32 %v1292_v43, %v900_v0  ;;  %v965_v46 = vmul.f32 %v1292_v43, %v901_v1  ;;  %v966_v47 = vmul.f32 %v1292_v43, %v902_v3  ;;  %v967_v49 = vmul.f32 %v1292_v43, %v903_v4 }
 0x404   :  { %v968_v50 = vmul.f32 %v1292_v43, %v904_v7  ;;  %v969_v52 = vmul.f32 %v1292_v43, %v905_v11  ;;  %v970_v51 = vmul.f32 %v1292_v43, %v906_v18  ;;  %v971_v48 = vmul.f32 %v1292_v43, %v907_v21 }
 0x405   :  { %972 = vst.msk [vmem:[%s1637_s9] sm:$0xff] %vm125_vm0, %v964_v44  ;;  %973 = vst.msk [vmem:[%s1637_s9 + $0x8] sm:$0xff] %vm125_vm0, %v965_v46 }
 0x406   :  { %974 = vst.msk [vmem:[%s1637_s9 + $0x10] sm:$0xff] %vm125_vm0, %v966_v47  ;;  %975 = vst.msk [vmem:[%s1637_s9 + $0x18] sm:$0xff] %vm125_vm0, %v967_v49 }
 0x407   :  { %976 = vst.msk [vmem:[%s1637_s9 + $0x20] sm:$0xff] %vm125_vm0, %v968_v50  ;;  %977 = vst.msk [vmem:[%s1637_s9 + $0x28] sm:$0xff] %vm125_vm0, %v969_v52 }
 0x408   :  { %978 = vst.msk [vmem:[%s1637_s9 + $0x30] sm:$0xff] %vm125_vm0, %v970_v51  ;;  %979 = vst.msk [vmem:[%s1637_s9 + $0x38] sm:$0xff] %vm125_vm0, %v971_v48 }

</bundles_post_ra>
